<compile_context>
chip_gen: v6e
topology: v6e:2x2x1
jax: 0.10.0
libtpu: 0.0.40
codegen_flags: <defaults>
</compile_context>

<pallas_src>
import functools

import jax
import jax.numpy as jnp
from jax.experimental import pallas as pl
from jax.experimental.pallas import tpu as pltpu

_MiB = 1024 * 1024


# ----------------------------------------------------------------------------
# Block / VMEM sizing helpers
# ----------------------------------------------------------------------------
def _sublane_multiple(itemsize):
    # Native sublane packing: f32 -> 8, bf16 -> 16, int8/fp8 -> 32.
    return max(8, 32 // max(1, int(itemsize)))


def _vmem_budget_bytes():
    """Generation-aware scoped-VMEM budget (~75% of physical, capped)."""
    phys = 64 * _MiB                     # conservative default (v7x per-TC)
    try:
        phys = int(pltpu.get_tpu_info().vmem_capacity_bytes)
    except Exception:
        pass
    return max(32 * _MiB, min((phys * 3) // 4, 96 * _MiB))


def _vmem_per_row_bytes(c, itemsize):
    # 2x double-buffered input tiles (logits + 128-lane-padded int32 target
    # column) + ~5 (TB, C) f32 temporaries (x upcast, z, ez, coef*z, z*ez).
    return 2 * (c * itemsize + 512) + 5 * 4 * c


def _choose_block_and_grid(b, c, itemsize, vmem_budget):
    sub = _sublane_multiple(itemsize)
    # ~4 MiB of logits per tile: keeps the ~0.35us per-grid-step overhead
    # small even at v7x HBM bandwidth; 4096-row cap bounds the strided int32
    # target-column DMA.
    rows = (4 * _MiB) // max(1, c * itemsize)
    rows = max(sub, min(4096, rows))
    # Keep tiles + temporaries within ~60% of the scoped-VMEM budget so
    # Mosaic has headroom for internal scratch.
    max_rows = max(sub, int(vmem_budget * 0.6) // _vmem_per_row_bytes(c, itemsize))
    rows = min(rows, max_rows)
    if b >= sub:
        rows = min(rows, b)
    rows = max(sub, (rows // sub) * sub)
    grid = pl.cdiv(b, rows)
    # Prefer an even grid so both TensorCores of a v7x megacore get equal
    # work under dimension_semantics=("parallel",).
    if grid > 1 and grid % 2 == 1:
        g2 = grid + 1
        r2 = max(sub, pl.cdiv(pl.cdiv(b, g2), sub) * sub)
        g2 = pl.cdiv(b, r2)
        if g2 % 2 == 0:
            rows, grid = r2, g2
    return rows, grid


# ----------------------------------------------------------------------------
# Kernels
# ----------------------------------------------------------------------------
def _row_stats(logits_ref, targets_ref, *, epsilon, num_classes, actual_batch,
               block_batch, need_entropy):
    """Per-row label-smoothed CE (and optional entropy); shapes (TB, 1) f32."""
    x = logits_ref[...].astype(jnp.float32)               # (TB, C)
    t = targets_ref[...]                                   # (TB, 1) int32
    tb, c = x.shape

    # Numerically stable softmax stats: one exp per element, one log per row.
    m = jnp.max(x, axis=1, keepdims=True)                  # (TB, 1)
    z = x - m                                              # (TB, C)
    ez = jnp.exp(z)                                        # (TB, C)
    sum_ez = jnp.sum(ez, axis=1, keepdims=True)            # (TB, 1)
    lse = jnp.log(sum_ez)                                  # (TB, 1)

    # Label-smoothed CE with target select + smoothing fused into a single
    # cross-lane reduction:
    #   sm = lse - sum_c coef_c * z_c,   coef_c = eps/C + (1-eps)*[c == t]
    col_ids = jax.lax.broadcasted_iota(jnp.int32, (tb, c), 1)
    base = epsilon / num_classes
    coef = jnp.where(col_ids == t, (1.0 - epsilon) + base, base)
    sm = lse - jnp.sum(coef * z, axis=1, keepdims=True)    # (TB, 1)

    # Mask rows past the true batch (ragged last grid block; no host pad).
    row_ids = (jax.lax.broadcasted_iota(jnp.int32, (tb, 1), 0)
               + pl.program_id(0) * block_batch)
    valid = row_ids < actual_batch                          # (TB, 1) bool

    ent = None
    if need_entropy:
        # ent = -sum_c p*log p = lse - sum_c(z*exp(z)) / sum_c(exp(z)).
        # Reuses ez; the reciprocal is per-row ((TB,1)-wide) on the EUP.
        # (Differs from the reference clamp(p,1e-12) form only where
        #  p < 1e-12, where p*log p ~ 0.)
        ent = lse - (jnp.sum(z * ez, axis=1, keepdims=True)
                     * pl.reciprocal(sum_ez, approx=True))
    return sm, ent, valid


def _ce_sum_kernel(logits_ref, targets_ref, sum_ref, *, epsilon, num_classes,
                   actual_batch, block_batch):
    sm, _, valid = _row_stats(
        logits_ref, targets_ref, epsilon=epsilon, num_classes=num_classes,
        actual_batch=actual_batch, block_batch=block_batch, need_entropy=False)
    sm = jnp.where(valid, sm, 0.0)
    sum_ref[...] = jnp.sum(sm, axis=0, keepdims=True).reshape(1, 1, 1)


def _ce_conf_penalty_kernel(logits_ref, targets_ref, sum_ref, cnt_ref, *,
                            epsilon, num_classes, actual_batch, block_batch):
    sm, ent, valid = _row_stats(
        logits_ref, targets_ref, epsilon=epsilon, num_classes=num_classes,
        actual_batch=actual_batch, block_batch=block_batch, need_entropy=True)
    raw = 5.0 * sm - 0.085 * ent
    hit = valid & (raw > 0.0)
    loss = jnp.where(hit, raw, 0.0)
    cnt = jnp.where(hit, 1.0, 0.0)
    sum_ref[...] = jnp.sum(loss, axis=0, keepdims=True).reshape(1, 1, 1)
    cnt_ref[...] = jnp.sum(cnt, axis=0, keepdims=True).reshape(1, 1, 1)


# ----------------------------------------------------------------------------
# Wrapper
# ----------------------------------------------------------------------------
def cross_entropy_loss(inputs, targets, *, num_classes, epsilon=0.1,
                       label_smooth=True, conf_penalty=0.0, block_batch=None):
    """Forward pass matching CrossEntropyLoss.forward.

    inputs : (B, num_classes) float logits (f32 or bf16; upcast in-kernel)
    targets: (B,) int labels
    returns: scalar float32 loss
    """
    eps = float(epsilon) if label_smooth else 0.0
    b, c = inputs.shape
    assert c == num_classes

    itemsize = jnp.dtype(inputs.dtype).itemsize
    vmem_budget = _vmem_budget_bytes()
    if block_batch is None:
        block_batch, grid = _choose_block_and_grid(b, c, itemsize, vmem_budget)
    else:
        sub = _sublane_multiple(itemsize)
        block_batch = max(sub, (int(block_batch) // sub) * sub)
        grid = pl.cdiv(b, block_batch)

    # No host-side padding (that would be a full extra HBM pass over the
    # logits); the ragged tail block is masked in-kernel.
    targets2d = targets.astype(jnp.int32).reshape(b, 1)

    in_specs = [
        pl.BlockSpec((block_batch, c), lambda i: (i, 0)),
        pl.BlockSpec((block_batch, 1), lambda i: (i, 0)),
    ]
    out_spec = pl.BlockSpec((1, 1, 1), lambda i: (i, 0, 0))
    compiler_params = pltpu.CompilerParams(
        dimension_semantics=("parallel",),     # megacore-shardable grid
        vmem_limit_bytes=vmem_budget,          # generation-aware scoped VMEM
    )
    common = dict(epsilon=eps, num_classes=num_classes,
                  actual_batch=b, block_batch=block_batch)

    if conf_penalty > 0.0:
        kernel = functools.partial(_ce_conf_penalty_kernel, **common)
        loss_sum, nz_cnt = pl.pallas_call(
            kernel,
            out_shape=(jax.ShapeDtypeStruct((grid, 1, 1), jnp.float32),
                       jax.ShapeDtypeStruct((grid, 1, 1), jnp.float32)),
            grid=(grid,),
            in_specs=in_specs,
            out_specs=(out_spec, out_spec),
            compiler_params=compiler_params,
        )(inputs, targets2d)
        # Matches the PyTorch module: divide by the nonzero count (NaN if all
        # relu outputs are exactly zero, same as the reference).
        return jnp.sum(loss_sum) / jnp.sum(nz_cnt)

    kernel = functools.partial(_ce_sum_kernel, **common)
    loss_sum = pl.pallas_call(
        kernel,
        out_shape=jax.ShapeDtypeStruct((grid, 1, 1), jnp.float32),
        grid=(grid,),
        in_specs=in_specs,
        out_specs=out_spec,
        compiler_params=compiler_params,
    )(inputs, targets2d)
    return jnp.sum(loss_sum) / b


# ----------------------------------------------------------------------------
# Pure-JAX reference mirroring the PyTorch forward
# ----------------------------------------------------------------------------
def _reference(inputs, targets, *, num_classes, epsilon, conf_penalty):
    log_probs = jax.nn.log_softmax(inputs.astype(jnp.float32), axis=1)
    one_hot = jax.nn.one_hot(targets, num_classes, dtype=jnp.float32)
    t = (1.0 - epsilon) * one_hot + epsilon / num_classes
    sm_loss = jnp.sum(-t * log_probs, axis=1)
    if conf_penalty > 0.0:
        probs = jnp.exp(log_probs)
        ent = jnp.sum(-probs * jnp.log(jnp.clip(probs, 1e-12)), axis=1)
        loss = jax.nn.relu(5.0 * sm_loss - 0.085 * ent)
        return jnp.sum(loss) / jnp.sum(loss != 0.0)
    return jnp.mean(sm_loss)


if __name__ == "__main__":
    key = jax.random.PRNGKey(0)
    k1, k2, k3, k4, k5, k6 = jax.random.split(key, 6)

    # Case 1: default config (label_smooth=True, eps=0.1, conf_penalty=0.0)
    batch, num_classes = 8, 128
    logits = jax.random.normal(k1, (batch, num_classes), dtype=jnp.float32)
    targets = jax.random.randint(k2, (batch,), 0, num_classes, dtype=jnp.int32)

    loss = cross_entropy_loss(logits, targets, num_classes=num_classes,
                              epsilon=0.1, label_smooth=True, conf_penalty=0.0)
    jax.block_until_ready(loss)
    ref = _reference(logits, targets, num_classes=num_classes,
                     epsilon=0.1, conf_penalty=0.0)
    assert jnp.allclose(loss, ref, atol=1e-5, rtol=1e-5), (loss, ref)

    # Case 2: confidence-penalty branch (approx reciprocal in the entropy
    # term -> slightly looser tolerance).
    loss_cp = cross_entropy_loss(logits, targets, num_classes=num_classes,
                                 epsilon=0.1, label_smooth=True,
                                 conf_penalty=0.3)
    jax.block_until_ready(loss_cp)
    ref_cp = _reference(logits, targets, num_classes=num_classes,
                        epsilon=0.1, conf_penalty=0.3)
    assert jnp.allclose(loss_cp, ref_cp, atol=1e-3, rtol=1e-3), (loss_cp, ref_cp)

    # Case 3: multi-block grid with a ragged (un-padded) tail block
    # (B=20 not a multiple of the 8-row block, C=96 not a multiple of 128).
    b2, c2 = 20, 96
    logits2 = jax.random.normal(k3, (b2, c2), dtype=jnp.float32)
    targets2 = jax.random.randint(k4, (b2,), 0, c2, dtype=jnp.int32)
    loss2 = cross_entropy_loss(logits2, targets2, num_classes=c2,
                               epsilon=0.1, label_smooth=True,
                               conf_penalty=0.0, block_batch=8)
    jax.block_until_ready(loss2)
    ref2 = _reference(logits2, targets2, num_classes=c2,
                      epsilon=0.1, conf_penalty=0.0)
    assert jnp.allclose(loss2, ref2, atol=1e-5, rtol=1e-5), (loss2, ref2)

    # Case 4: bf16 logits exercise the 16-row sublane rounding + auto block
    # picking (B=40 -> block 32, even grid of 2, ragged masked tail).
    b3, c3 = 40, 128
    logits3 = jax.random.normal(k5, (b3, c3), dtype=jnp.float32).astype(jnp.bfloat16)
    targets3 = jax.random.randint(k6, (b3,), 0, c3, dtype=jnp.int32)
    loss3 = cross_entropy_loss(logits3, targets3, num_classes=c3,
                               epsilon=0.1, label_smooth=True, conf_penalty=0.0)
    jax.block_until_ready(loss3)
    ref3 = _reference(logits3, targets3, num_classes=c3,
                      epsilon=0.1, conf_penalty=0.0)
    assert jnp.allclose(loss3, ref3, atol=1e-4, rtol=1e-4), (loss3, ref3)

    print("KERNEL_OK")
</pallas_src>

<mosaic_0001>
module attributes {stable_mosaic.version = 11 : i64} {
  func.func @_ce_sum_kernel(%arg0: i32, %arg1: memref<8x128xf32, #tpu.memory_space<vmem>>, %arg2: memref<8x1xi32, #tpu.memory_space<vmem>>, %arg3: memref<1x1x1xf32, #tpu.memory_space<vmem>>) attributes {dimension_semantics = [#tpu.dimension_semantics<parallel>], iteration_bounds = array<i64: 1>, scalar_prefetch = 0 : i64, scratch_operands = 0 : i64, tpu.core_type = #tpu.core_type<tc>, window_params = [{transform_indices = @transform_0, window_bounds = array<i64: 8, 128>}, {transform_indices = @transform_1, window_bounds = array<i64: 8, 1>}, {transform_indices = @transform_2, window_bounds = array<i64: 1, 1, 1>}]} {
    %c0 = arith.constant 0 : index
    %c0_0 = arith.constant 0 : index
    %0 = vector.load %arg1[%c0, %c0_0] : memref<8x128xf32, #tpu.memory_space<vmem>>, vector<8x128xf32>
    %c0_1 = arith.constant 0 : index
    %c0_2 = arith.constant 0 : index
    %1 = vector.load %arg2[%c0_1, %c0_2] : memref<8x1xi32, #tpu.memory_space<vmem>>, vector<8x1xi32>
    %cst = arith.constant dense<0xFF800000> : vector<8xf32>
    %2 = vector.multi_reduction <maximumf>, %0, %cst [1] : vector<8x128xf32> to vector<8xf32>
    %3 = vector.shape_cast %2 : vector<8xf32> to vector<8x1xf32>
    %4 = vector.broadcast %3 : vector<8x1xf32> to vector<8x128xf32>
    %5 = arith.subf %0, %4 : vector<8x128xf32>
    %6 = math.exp %5 : vector<8x128xf32>
    %cst_3 = arith.constant dense<0.000000e+00> : vector<8xf32>
    %7 = vector.multi_reduction <add>, %6, %cst_3 [1] : vector<8x128xf32> to vector<8xf32>
    %8 = vector.shape_cast %7 : vector<8xf32> to vector<8x1xf32>
    %9 = math.log %8 : vector<8x1xf32>
    %10 = tpu.iota {dimensions = array<i32: 1>} : vector<8x128xi32>
    %11 = vector.broadcast %1 : vector<8x1xi32> to vector<8x128xi32>
    %12 = arith.cmpi eq, %10, %11 : vector<8x128xi32>
    %cst_4 = arith.constant 0.900781273 : f32
    %cst_5 = arith.constant 7.812500e-04 : f32
    %13 = vector.broadcast %cst_4 : f32 to vector<8x128xf32>
    %14 = vector.broadcast %cst_5 : f32 to vector<8x128xf32>
    %15 = arith.select %12, %13, %14 : vector<8x128xi1>, vector<8x128xf32>
    %16 = arith.mulf %15, %5 : vector<8x128xf32>
    %cst_6 = arith.constant dense<0.000000e+00> : vector<8xf32>
    %17 = vector.multi_reduction <add>, %16, %cst_6 [1] : vector<8x128xf32> to vector<8xf32>
    %18 = vector.shape_cast %17 : vector<8xf32> to vector<8x1xf32>
    %19 = arith.subf %9, %18 : vector<8x1xf32>
    %20 = tpu.iota {dimensions = array<i32: 0>} : vector<8x1xi32>
    %c8_i32 = arith.constant 8 : i32
    %21 = arith.muli %arg0, %c8_i32 : i32
    %22 = vector.broadcast %21 : i32 to vector<8x1xi32>
    %23 = arith.addi %20, %22 : vector<8x1xi32>
    %c8_i32_7 = arith.constant 8 : i32
    %24 = vector.broadcast %c8_i32_7 : i32 to vector<8x1xi32>
    %25 = arith.cmpi slt, %23, %24 : vector<8x1xi32>
    %cst_8 = arith.constant 0.000000e+00 : f32
    %26 = vector.broadcast %cst_8 : f32 to vector<8x1xf32>
    %27 = arith.select %25, %19, %26 : vector<8x1xi1>, vector<8x1xf32>
    %cst_9 = arith.constant dense<0.000000e+00> : vector<1xf32>
    %28 = vector.multi_reduction <add>, %27, %cst_9 [0] : vector<8x1xf32> to vector<1xf32>
    %29 = vector.shape_cast %28 : vector<1xf32> to vector<1x1xf32>
    %30 = vector.shape_cast %29 : vector<1x1xf32> to vector<1x1x1xf32>
    %c0_10 = arith.constant 0 : index
    %c0_11 = arith.constant 0 : index
    %c0_12 = arith.constant 0 : index
    %31 = vector.load %arg3[%c0_10, %c0_11, %c0_12] : memref<1x1x1xf32, #tpu.memory_space<vmem>>, vector<1x1x1xf32>
    tpu.vector_store %arg3[%c0_10, %c0_11, %c0_12], %30 {strides = array<i32>} : memref<1x1x1xf32, #tpu.memory_space<vmem>>, vector<1x1x1xf32>,
    return
  }
  func.func @transform_0(%arg0: i32) -> (i32, i32) {
    %c0_i32 = arith.constant 0 : i32
    %c0_i32_0 = arith.constant 0 : i32
    return %arg0, %c0_i32 : i32, i32
  }
  func.func @transform_1(%arg0: i32) -> (i32, i32) {
    %c0_i32 = arith.constant 0 : i32
    %c0_i32_0 = arith.constant 0 : i32
    return %arg0, %c0_i32 : i32, i32
  }
  func.func @transform_2(%arg0: i32) -> (i32, i32, i32) {
    %c0_i32 = arith.constant 0 : i32
    %c0_i32_0 = arith.constant 0 : i32
    %c0_i32_1 = arith.constant 0 : i32
    return %arg0, %c0_i32, %c0_i32_0 : i32, i32, i32
  }
}

</mosaic_0001>

<bundles_post_ra>
// kernel: tpu_custom_call.1
= control target key start
LH: loop header
LB: loop body
LE: loop exit
PB: predicated region body
PF: predicated region fallthrough
CT: control target
= control target key end

     0   :  { %s120_s0 = inlined_call_operand.vmem [shape: f32[8,128], index: 0, kind: input, shape index: {}]   ;;  %s121_s1 = inlined_call_operand.vmem [shape: s32[8,1], index: 1, kind: input, shape index: {}]   ;;  %s122_s2 = inlined_call_operand.hbm [shape: f32[1,1,1], index: 2, kind: output, shape index: {}]  }
   0x1   :  { %v12_v0 = vld [vmem:[%s120_s0] sm:$0xff] }
   0x2   :  { %7 = vsyncpa [#allocation3], 0  ;;  %14 = vmax.xlane.f32.xlu0 %v12_v0  ;;  %v93_v1 = vmov 0   ;;  %v13_v2 = vld [vmem:[%s121_s1] sm:$0xff]  ;;  %v23_v6 = vlaneseq  ;;  %v94_v10 = vmov 0.00078125  }
   0x3   :  { %66 = vset.pattern.permute.xlu0 %v93_v1  ;;  %s95_s0 = smov [#allocation2]   ;;  %vm47_vm1 = vcmask 0  }
   0x4   :  { %v24_v7 = vand.u32 127, %v23_v6  ;;  %s55_s1 = sshll.u32 %s95_s0, 4  ;;  %s56_s1 = int_to_ptr.vmem [resolvable:$true] %s55_s1 }
   0x5   :  { %s71_s13 = scalar_lea.vmem %s56_s1, 16  ;;  %s75_s14 = scalar_lea.vmem %s56_s1, 32 }
   0x6   :  { %p72_p0 = scmp.ne.s32.totalorder %s56_s1, %s71_s13  ;;  %p76_p1 = scmp.lt.s32.totalorder %s56_s1, %s56_s1 }
   0x7   :  { %p77_p2 = scmp.lt.s32.totalorder %s75_s14, %s71_s13 }
   0x9   :  { %p78_p3 = por %p77_p2, %p76_p1 }
   0xb   :  { %p79_p4 = pnand %p78_p3, %p72_p0 }
  0x18   :  { %26 = vperm.xlu0 %66, %v13_v2  }
  0x8b   :  { %v15_v3 = vpop.xlane.xlu0 %14 }
  0x8c   :  { %v16_v4 = vsub.f32 %v12_v0, %v15_v3 }
  0x8e   :  { %v17_v5 = vmul.f32 1.442695, %v16_v4 }
  0x90   :  { %67 = vpow2.f32 %v17_v5 }
  0x93   :  { %v27_v8 = vpop.permute.xlu0 %26 }
  0x94   :  { %vm28_vm0 = vcmp.eq.s32.totalorder %v24_v7, %v27_v8 }
  0x95   :  { %v29_v11 = vsel %vm28_vm0, 0.9007813, %v94_v10 }
  0x96   :  { %v30_v12 = vmul.f32 %v29_v11, %v16_v4 }
  0x9d   :  { %v68_v9 = vpop.eup %67 }
  0x9e   :  { %19 = vadd.xlane.f32.xlu1 %v68_v9 }
  0xa2   :  { %31 = vadd.xlane.f32.xlu1 %v30_v12 }
 0x127   :  { %v20_v13 = vpop.xlane.xlu1 %19 }
 0x128   :  { %69 = vlog2.f32 %v20_v13 }
 0x12b   :  { %v32_v16 = vpop.xlane.xlu1 %31 }
 0x135   :  { %v70_v14 = vpop.eup %69 }
 0x136   :  { %v22_v15 = vmul.f32 0.6931472, %v70_v14 }
 0x138   :  { %v33_v17 = vsub.f32 %v22_v15, %v32_v16 }
 0x13a   :  { %v41_v18 = vrot.slane %v33_v17, 4 }
 0x13c   :  { %v42_v19 = vadd.f32 %v41_v18, %v33_v17 }
 0x13e   :  { %v43_v20 = vrot.slane %v42_v19, 2 }
 0x140   :  { %v44_v21 = vadd.f32 %v43_v20, %v42_v19 }
 0x142   :  { %v45_v22 = vrot.slane %v44_v21, 1 }
 0x144   :  { %v46_v23 = vadd.f32 %v45_v22, %v44_v21 }
 0x146   :  { %48 = vst.msk [vmem:[#allocation2] sm:$0x1] %vm47_vm1, %v46_v23 }
 0x147   :  { %82 = shalt.err (!%p79_p4)
}
 0x148   :  { %58 = dma.vmem_to_hbm [thread:$0]  %s56_s1, 16, %s122_s2, [#allocation3]  }
 0x149   :  { %91 = dma.done.wait [#allocation3], 16  }
 0x14a   :  { %92 = vsyncadd [#allocation3], 4294967280 }
 0x14b   :  { %62 = vsyncpa [#allocation3], 1 }

</bundles_post_ra>
